<compile_context>
chip_gen: v6e
topology: v6e:2x2x1
jax: 0.10.0
libtpu: 0.0.40
codegen_flags: <defaults>
</compile_context>

<pallas_src>
import jax
import jax.numpy as jnp
from jax.experimental import pallas as pl
from jax.experimental.pallas import tpu as pltpu


def graphsage_kernel(x_ref, idx_ref, w1t_ref, b1_ref, w2a_ref, w2b_ref, b2_ref,
                     out_ref, h_scr):
    # x_ref:   (1, C_in, N)      full channel-first vertex features, batch b
    # idx_ref: (1, K, TILE_N)    neighbor ids for this row tile (k-major)
    # h_scr:   (C_in, N)         VMEM cache of relu(w1^T x + b1), persists over t
    # out_ref: (1, C_out, TILE_N) lane-dense output tile
    t = pl.program_id(1)

    x = x_ref[0]                                        # (C_in, N) f32
    c_in, n_full = x.shape
    idx = idx_ref[0]                                    # (K, TILE_N) int32
    k, tile_n = idx.shape

    # nn1 applied once per vertex, computed only on the first tile of this batch
    # element and cached in VMEM scratch for the remaining tiles.
    @pl.when(t == 0)
    def _():
        h = jnp.dot(w1t_ref[...], x, preferred_element_type=jnp.float32)
        h_scr[...] = jnp.maximum(h + b1_ref[...], 0.0)  # (C_in, N)

    h_all = h_scr[...]                                  # (C_in, N)

    # Neighbor gather + max:  K one-hot MXU matmuls with a running VPU max.
    #   onehot[m, n] = (idx[kk, n] == m)  -> (N, TILE_N)
    # Out-of-range ids gather zeros (no runtime check), matching the previous
    # kernel; indices are assumed in [0, N).
    iota = jax.lax.broadcasted_iota(jnp.int32, (n_full, tile_n), 0)
    agg = None
    for kk in range(k):                                 # K is small and static
        row = idx[kk:kk + 1, :]                         # (1, TILE_N)
        onehot = (iota == row).astype(jnp.float32)      # (N, TILE_N)
        g = jnp.dot(h_all, onehot,
                    preferred_element_type=jnp.float32)  # (C_in, TILE_N)
        agg = g if agg is None else jnp.maximum(agg, g)

    # This tile's own features (lane slice, already channel-first).
    if tile_n == n_full:
        x_tile = x
    else:
        start = pl.multiple_of(t * tile_n, 128)         # TILE_N % 128 == 0 here
        x_tile = x_ref[0, :, pl.ds(start, tile_n)]      # (C_in, TILE_N)

    # nn2 with the concat folded into two matmuls on the split weight.
    out = (jnp.dot(w2a_ref[...], x_tile, preferred_element_type=jnp.float32)
           + jnp.dot(w2b_ref[...], agg, preferred_element_type=jnp.float32)
           + b2_ref[...])
    out_ref[0] = jnp.maximum(out, 0.0).astype(out_ref.dtype)  # (C_out, TILE_N)


def _pick_tile_n(n, budget_bytes=12 * 1024 * 1024):
    """Largest row tile whose one-hot temporaries fit a modest VMEM budget.

    Returns N itself when it fits; otherwise a multiple of 128 dividing N
    (required for the lane-dense output / index BlockSpecs)."""
    tile = n
    while tile % 256 == 0 and 8 * n * tile > budget_bytes:
        tile //= 2
    return tile


def graphsage_forward(x_nchw, edge_index, params):
    """x_nchw: (B, C_in, N, 1) f32; edge_index: (2, B, N, K) int32."""
    w1, b1, w2, b2 = params
    B, C_in, N, _ = x_nchw.shape
    K = edge_index.shape[-1]
    C_out = w2.shape[1]

    # channel-first features: no transpose needed, just drop the trailing axis.
    x_cf = x_nchw[..., 0].astype(jnp.float32)                       # (B, C_in, N)
    # neighbor ids, k-major with vertices on the lane axis: (B, K, N)
    idx = jnp.transpose(edge_index[0].astype(jnp.int32), (0, 2, 1))

    # weights pre-transposed for the channel-first kernel.
    w1t = jnp.asarray(w1, jnp.float32).T                            # (C_in, C_in)
    b1c = jnp.asarray(b1, jnp.float32).reshape(C_in, 1)             # (C_in, 1)
    w2a = jnp.asarray(w2[:C_in], jnp.float32).T                     # (C_out, C_in)
    w2b = jnp.asarray(w2[C_in:], jnp.float32).T                     # (C_out, C_in)
    b2c = jnp.asarray(b2, jnp.float32).reshape(C_out, 1)            # (C_out, 1)

    TILE_N = _pick_tile_n(N)
    num_tiles = N // TILE_N

    # advisory cost + explicit VMEM sizing (headroom for double buffering).
    flops = 2 * B * (N * C_in * C_in + K * C_in * N * N + N * 2 * C_in * C_out)
    bytes_accessed = 4 * (x_cf.size + idx.size + B * C_out * N
                          + w1t.size + b1c.size + w2a.size + w2b.size + b2c.size)
    cost = pl.CostEstimate(flops=flops, transcendentals=0,
                           bytes_accessed=bytes_accessed)
    work_bytes = (
        2 * C_in * N * 4                   # x block (double-buffered)
        + 2 * K * TILE_N * 4               # idx block
        + 2 * C_out * TILE_N * 4           # out block
        + C_in * N * 4                     # h_all scratch
        + 2 * N * TILE_N * 4               # iota + one-hot temporaries
        + 4 * C_in * TILE_N * 4            # gather / running-max temporaries
        + 2 * 4 * (C_in * C_in + 2 * C_out * C_in + C_in + C_out)  # weights
    )
    vmem_limit = int(min(52 * 1024 * 1024, max(16 * 1024 * 1024, 2 * work_bytes)))

    out = pl.pallas_call(
        graphsage_kernel,
        out_shape=jax.ShapeDtypeStruct((B, C_out, N), jnp.float32),
        grid=(B, num_tiles),
        in_specs=[
            pl.BlockSpec((1, C_in, N), lambda b, t: (b, 0, 0)),
            pl.BlockSpec((1, K, TILE_N), lambda b, t: (b, 0, t)),
            pl.BlockSpec((C_in, C_in), lambda b, t: (0, 0)),
            pl.BlockSpec((C_in, 1), lambda b, t: (0, 0)),
            pl.BlockSpec((C_out, C_in), lambda b, t: (0, 0)),
            pl.BlockSpec((C_out, C_in), lambda b, t: (0, 0)),
            pl.BlockSpec((C_out, 1), lambda b, t: (0, 0)),
        ],
        out_specs=pl.BlockSpec((1, C_out, TILE_N), lambda b, t: (b, 0, t)),
        scratch_shapes=[pltpu.VMEM((C_in, N), jnp.float32)],
        compiler_params=pltpu.CompilerParams(
            # t must be sequential so the h_all scratch computed at t==0 is
            # valid for the remaining tiles of the same batch element.
            dimension_semantics=("parallel", "arbitrary"),
            vmem_limit_bytes=vmem_limit,
        ),
        cost_estimate=cost,
    )(x_cf, idx, w1t, b1c, w2a, w2b, b2c)

    # output is already (B, C_out, N); just restore the trailing NCHW axis.
    return out[..., None]


def init_params(key, c_in, c_out):
    """Deterministic synthetic weights (1x1 conv == dense over channels)."""
    k1, k2, k3, k4 = jax.random.split(key, 4)
    # stored pre-transposed: (fan_in, fan_out)
    w1 = jax.random.normal(k1, (c_in, c_in), jnp.float32) / jnp.sqrt(c_in)
    b1 = jax.random.normal(k2, (1, c_in), jnp.float32) * 0.1
    w2 = jax.random.normal(k3, (2 * c_in, c_out), jnp.float32) / jnp.sqrt(2 * c_in)
    b2 = jax.random.normal(k4, (1, c_out), jnp.float32) * 0.1
    return (w1, b1, w2, b2)


def reference_forward(x_nchw, edge_index, params):
    """Pure-JAX reference matching the PyTorch module."""
    w1, b1, w2, b2 = params
    x = jnp.transpose(x_nchw[..., 0], (0, 2, 1))            # (B, N, C_in)
    idx = edge_index[0]                                     # (B, N, K)
    x_j = jax.vmap(lambda xb, ib: xb[ib])(x, idx)           # (B, N, K, C_in)
    h1 = jnp.maximum(jnp.einsum("bnkc,cd->bnkd", x_j, w1) + b1[0], 0.0)
    h1 = jnp.max(h1, axis=2)                                # (B, N, C_in)
    cat = jnp.concatenate([x, h1], axis=-1)                 # (B, N, 2*C_in)
    out = jnp.maximum(jnp.einsum("bnc,cd->bnd", cat, w2) + b2[0], 0.0)
    return jnp.transpose(out, (0, 2, 1))[..., None]         # (B, C_out, N, 1)


if __name__ == "__main__":
    B, C_in, C_out, N, K = 2, 4, 8, 16, 8

    key = jax.random.PRNGKey(0)
    kx, ke, kp = jax.random.split(key, 3)

    x = jax.random.normal(kx, (B, C_in, N, 1), jnp.float32)          # NCHW
    edge_index = jax.random.randint(ke, (2, B, N, K), 0, N, jnp.int32)
    params = init_params(kp, C_in, C_out)

    out = graphsage_forward(x, edge_index, params)
    out = jax.block_until_ready(out)

    ref = reference_forward(x, edge_index, params)
    assert out.shape == (B, C_out, N, 1), out.shape
    assert jnp.allclose(out, ref, atol=1e-5, rtol=1e-5), "mismatch vs reference"

    print("KERNEL_OK")
</pallas_src>

<mosaic_0001>
module attributes {stable_mosaic.version = 11 : i64} {
  func.func @graphsage_kernel(%arg0: i32, %arg1: i32, %arg2: memref<1x4x16xf32, #tpu.memory_space<vmem>>, %arg3: memref<1x8x16xi32, #tpu.memory_space<vmem>>, %arg4: memref<4x4xf32, #tpu.memory_space<vmem>>, %arg5: memref<4x1xf32, #tpu.memory_space<vmem>>, %arg6: memref<8x4xf32, #tpu.memory_space<vmem>>, %arg7: memref<8x4xf32, #tpu.memory_space<vmem>>, %arg8: memref<8x1xf32, #tpu.memory_space<vmem>>, %arg9: memref<1x8x16xf32, #tpu.memory_space<vmem>>, %arg10: memref<4x16xf32, #tpu.memory_space<vmem>>) attributes {dimension_semantics = [#tpu.dimension_semantics<parallel>, #tpu.dimension_semantics<arbitrary>], iteration_bounds = array<i64: 2, 1>, scalar_prefetch = 0 : i64, scratch_operands = 1 : i64, tpu.core_type = #tpu.core_type<tc>, window_params = [{transform_indices = @transform_0, window_bounds = array<i64: 1, 4, 16>}, {transform_indices = @transform_1, window_bounds = array<i64: 1, 8, 16>}, {pipeline_mode = #tpu.pipeline_mode<synchronous>, transform_indices = @transform_2, window_bounds = array<i64: 4, 4>}, {pipeline_mode = #tpu.pipeline_mode<synchronous>, transform_indices = @transform_3, window_bounds = array<i64: 4, 1>}, {pipeline_mode = #tpu.pipeline_mode<synchronous>, transform_indices = @transform_4, window_bounds = array<i64: 8, 4>}, {pipeline_mode = #tpu.pipeline_mode<synchronous>, transform_indices = @transform_5, window_bounds = array<i64: 8, 4>}, {pipeline_mode = #tpu.pipeline_mode<synchronous>, transform_indices = @transform_6, window_bounds = array<i64: 8, 1>}, {transform_indices = @transform_7, window_bounds = array<i64: 1, 8, 16>}]} {
    %c0 = arith.constant 0 : index
    %c0_0 = arith.constant 0 : index
    %c0_1 = arith.constant 0 : index
    %0 = vector.load %arg2[%c0, %c0_0, %c0_1] : memref<1x4x16xf32, #tpu.memory_space<vmem>>, vector<1x4x16xf32>
    %1 = vector.shape_cast %0 : vector<1x4x16xf32> to vector<4x16xf32>
    %c0_2 = arith.constant 0 : index
    %c0_3 = arith.constant 0 : index
    %c0_4 = arith.constant 0 : index
    %2 = vector.load %arg3[%c0_2, %c0_3, %c0_4] : memref<1x8x16xi32, #tpu.memory_space<vmem>>, vector<1x8x16xi32>
    %3 = vector.shape_cast %2 : vector<1x8x16xi32> to vector<8x16xi32>
    %c0_i32 = arith.constant 0 : i32
    %4 = arith.cmpi eq, %arg1, %c0_i32 : i32
    %5 = arith.extui %4 : i1 to i32
    %c0_i32_5 = arith.constant 0 : i32
    %6 = arith.cmpi ne, %5, %c0_i32_5 : i32
    scf.if %6 {
      %c0_27 = arith.constant 0 : index
      %c0_28 = arith.constant 0 : index
      %77 = vector.load %arg4[%c0_27, %c0_28] : memref<4x4xf32, #tpu.memory_space<vmem>>, vector<4x4xf32>
      %cst_29 = arith.constant dense<0.000000e+00> : vector<4x16xf32>
      %78 = tpu.matmul %77, %1, %cst_29 {dimension_numbers = #tpu.dot_dimension_numbers<[1], [0], [0], [1], [0, 0, 1, 1], [], []>} : vector<4x4xf32>, vector<4x16xf32>, vector<4x16xf32> -> vector<4x16xf32>
      %c0_30 = arith.constant 0 : index
      %c0_31 = arith.constant 0 : index
      %79 = vector.load %arg5[%c0_30, %c0_31] : memref<4x1xf32, #tpu.memory_space<vmem>>, vector<4x1xf32>
      %80 = vector.broadcast %79 : vector<4x1xf32> to vector<4x16xf32>
      %81 = arith.addf %78, %80 : vector<4x16xf32>
      %cst_32 = arith.constant 0.000000e+00 : f32
      %82 = vector.broadcast %cst_32 : f32 to vector<4x16xf32>
      %83 = arith.maximumf %81, %82 : vector<4x16xf32>
      %c0_33 = arith.constant 0 : index
      %c0_34 = arith.constant 0 : index
      %84 = vector.load %arg10[%c0_33, %c0_34] : memref<4x16xf32, #tpu.memory_space<vmem>>, vector<4x16xf32>
      tpu.vector_store %arg10[%c0_33, %c0_34], %83 {strides = array<i32>} : memref<4x16xf32, #tpu.memory_space<vmem>>, vector<4x16xf32>,
    } else {
    }
    %c0_6 = arith.constant 0 : index
    %c0_7 = arith.constant 0 : index
    %7 = vector.load %arg10[%c0_6, %c0_7] : memref<4x16xf32, #tpu.memory_space<vmem>>, vector<4x16xf32>
    %8 = tpu.iota {dimensions = array<i32: 0>} : vector<16x16xi32>
    %9 = vector.extract_strided_slice %3 {offsets = [0, 0], sizes = [1, 16], strides = [1, 1]} : vector<8x16xi32> to vector<1x16xi32>
    %10 = vector.broadcast %9 : vector<1x16xi32> to vector<16x16xi32>
    %11 = arith.cmpi eq, %8, %10 : vector<16x16xi32>
    %12 = arith.extui %11 : vector<16x16xi1> to vector<16x16xi32>
    %13 = arith.sitofp %12 : vector<16x16xi32> to vector<16x16xf32>
    %cst = arith.constant dense<0.000000e+00> : vector<4x16xf32>
    %14 = tpu.matmul %7, %13, %cst {dimension_numbers = #tpu.dot_dimension_numbers<[1], [0], [0], [1], [0, 0, 1, 1], [], []>} : vector<4x16xf32>, vector<16x16xf32>, vector<4x16xf32> -> vector<4x16xf32>
    %15 = vector.extract_strided_slice %3 {offsets = [1, 0], sizes = [1, 16], strides = [1, 1]} : vector<8x16xi32> to vector<1x16xi32>
    %16 = vector.broadcast %15 : vector<1x16xi32> to vector<16x16xi32>
    %17 = arith.cmpi eq, %8, %16 : vector<16x16xi32>
    %18 = arith.extui %17 : vector<16x16xi1> to vector<16x16xi32>
    %19 = arith.sitofp %18 : vector<16x16xi32> to vector<16x16xf32>
    %cst_8 = arith.constant dense<0.000000e+00> : vector<4x16xf32>
    %20 = tpu.matmul %7, %19, %cst_8 {dimension_numbers = #tpu.dot_dimension_numbers<[1], [0], [0], [1], [0, 0, 1, 1], [], []>} : vector<4x16xf32>, vector<16x16xf32>, vector<4x16xf32> -> vector<4x16xf32>
    %21 = arith.maximumf %14, %20 : vector<4x16xf32>
    %22 = vector.extract_strided_slice %3 {offsets = [2, 0], sizes = [1, 16], strides = [1, 1]} : vector<8x16xi32> to vector<1x16xi32>
    %23 = vector.broadcast %22 : vector<1x16xi32> to vector<16x16xi32>
    %24 = arith.cmpi eq, %8, %23 : vector<16x16xi32>
    %25 = arith.extui %24 : vector<16x16xi1> to vector<16x16xi32>
    %26 = arith.sitofp %25 : vector<16x16xi32> to vector<16x16xf32>
    %cst_9 = arith.constant dense<0.000000e+00> : vector<4x16xf32>
    %27 = tpu.matmul %7, %26, %cst_9 {dimension_numbers = #tpu.dot_dimension_numbers<[1], [0], [0], [1], [0, 0, 1, 1], [], []>} : vector<4x16xf32>, vector<16x16xf32>, vector<4x16xf32> -> vector<4x16xf32>
    %28 = arith.maximumf %21, %27 : vector<4x16xf32>
    %29 = vector.extract_strided_slice %3 {offsets = [3, 0], sizes = [1, 16], strides = [1, 1]} : vector<8x16xi32> to vector<1x16xi32>
    %30 = vector.broadcast %29 : vector<1x16xi32> to vector<16x16xi32>
    %31 = arith.cmpi eq, %8, %30 : vector<16x16xi32>
    %32 = arith.extui %31 : vector<16x16xi1> to vector<16x16xi32>
    %33 = arith.sitofp %32 : vector<16x16xi32> to vector<16x16xf32>
    %cst_10 = arith.constant dense<0.000000e+00> : vector<4x16xf32>
    %34 = tpu.matmul %7, %33, %cst_10 {dimension_numbers = #tpu.dot_dimension_numbers<[1], [0], [0], [1], [0, 0, 1, 1], [], []>} : vector<4x16xf32>, vector<16x16xf32>, vector<4x16xf32> -> vector<4x16xf32>
    %35 = arith.maximumf %28, %34 : vector<4x16xf32>
    %36 = vector.extract_strided_slice %3 {offsets = [4, 0], sizes = [1, 16], strides = [1, 1]} : vector<8x16xi32> to vector<1x16xi32>
    %37 = vector.broadcast %36 : vector<1x16xi32> to vector<16x16xi32>
    %38 = arith.cmpi eq, %8, %37 : vector<16x16xi32>
    %39 = arith.extui %38 : vector<16x16xi1> to vector<16x16xi32>
    %40 = arith.sitofp %39 : vector<16x16xi32> to vector<16x16xf32>
    %cst_11 = arith.constant dense<0.000000e+00> : vector<4x16xf32>
    %41 = tpu.matmul %7, %40, %cst_11 {dimension_numbers = #tpu.dot_dimension_numbers<[1], [0], [0], [1], [0, 0, 1, 1], [], []>} : vector<4x16xf32>, vector<16x16xf32>, vector<4x16xf32> -> vector<4x16xf32>
    %42 = arith.maximumf %35, %41 : vector<4x16xf32>
    %43 = vector.extract_strided_slice %3 {offsets = [5, 0], sizes = [1, 16], strides = [1, 1]} : vector<8x16xi32> to vector<1x16xi32>
    %44 = vector.broadcast %43 : vector<1x16xi32> to vector<16x16xi32>
    %45 = arith.cmpi eq, %8, %44 : vector<16x16xi32>
    %46 = arith.extui %45 : vector<16x16xi1> to vector<16x16xi32>
    %47 = arith.sitofp %46 : vector<16x16xi32> to vector<16x16xf32>
    %cst_12 = arith.constant dense<0.000000e+00> : vector<4x16xf32>
    %48 = tpu.matmul %7, %47, %cst_12 {dimension_numbers = #tpu.dot_dimension_numbers<[1], [0], [0], [1], [0, 0, 1, 1], [], []>} : vector<4x16xf32>, vector<16x16xf32>, vector<4x16xf32> -> vector<4x16xf32>
    %49 = arith.maximumf %42, %48 : vector<4x16xf32>
    %50 = vector.extract_strided_slice %3 {offsets = [6, 0], sizes = [1, 16], strides = [1, 1]} : vector<8x16xi32> to vector<1x16xi32>
    %51 = vector.broadcast %50 : vector<1x16xi32> to vector<16x16xi32>
    %52 = arith.cmpi eq, %8, %51 : vector<16x16xi32>
    %53 = arith.extui %52 : vector<16x16xi1> to vector<16x16xi32>
    %54 = arith.sitofp %53 : vector<16x16xi32> to vector<16x16xf32>
    %cst_13 = arith.constant dense<0.000000e+00> : vector<4x16xf32>
    %55 = tpu.matmul %7, %54, %cst_13 {dimension_numbers = #tpu.dot_dimension_numbers<[1], [0], [0], [1], [0, 0, 1, 1], [], []>} : vector<4x16xf32>, vector<16x16xf32>, vector<4x16xf32> -> vector<4x16xf32>
    %56 = arith.maximumf %49, %55 : vector<4x16xf32>
    %57 = vector.extract_strided_slice %3 {offsets = [7, 0], sizes = [1, 16], strides = [1, 1]} : vector<8x16xi32> to vector<1x16xi32>
    %58 = vector.broadcast %57 : vector<1x16xi32> to vector<16x16xi32>
    %59 = arith.cmpi eq, %8, %58 : vector<16x16xi32>
    %60 = arith.extui %59 : vector<16x16xi1> to vector<16x16xi32>
    %61 = arith.sitofp %60 : vector<16x16xi32> to vector<16x16xf32>
    %cst_14 = arith.constant dense<0.000000e+00> : vector<4x16xf32>
    %62 = tpu.matmul %7, %61, %cst_14 {dimension_numbers = #tpu.dot_dimension_numbers<[1], [0], [0], [1], [0, 0, 1, 1], [], []>} : vector<4x16xf32>, vector<16x16xf32>, vector<4x16xf32> -> vector<4x16xf32>
    %63 = arith.maximumf %56, %62 : vector<4x16xf32>
    %c0_15 = arith.constant 0 : index
    %c0_16 = arith.constant 0 : index
    %64 = vector.load %arg6[%c0_15, %c0_16] : memref<8x4xf32, #tpu.memory_space<vmem>>, vector<8x4xf32>
    %cst_17 = arith.constant dense<0.000000e+00> : vector<8x16xf32>
    %65 = tpu.matmul %64, %1, %cst_17 {dimension_numbers = #tpu.dot_dimension_numbers<[1], [0], [0], [1], [0, 0, 1, 1], [], []>} : vector<8x4xf32>, vector<4x16xf32>, vector<8x16xf32> -> vector<8x16xf32>
    %c0_18 = arith.constant 0 : index
    %c0_19 = arith.constant 0 : index
    %66 = vector.load %arg7[%c0_18, %c0_19] : memref<8x4xf32, #tpu.memory_space<vmem>>, vector<8x4xf32>
    %cst_20 = arith.constant dense<0.000000e+00> : vector<8x16xf32>
    %67 = tpu.matmul %66, %63, %cst_20 {dimension_numbers = #tpu.dot_dimension_numbers<[1], [0], [0], [1], [0, 0, 1, 1], [], []>} : vector<8x4xf32>, vector<4x16xf32>, vector<8x16xf32> -> vector<8x16xf32>
    %68 = arith.addf %65, %67 : vector<8x16xf32>
    %c0_21 = arith.constant 0 : index
    %c0_22 = arith.constant 0 : index
    %69 = vector.load %arg8[%c0_21, %c0_22] : memref<8x1xf32, #tpu.memory_space<vmem>>, vector<8x1xf32>
    %70 = vector.broadcast %69 : vector<8x1xf32> to vector<8x16xf32>
    %71 = arith.addf %68, %70 : vector<8x16xf32>
    %cst_23 = arith.constant 0.000000e+00 : f32
    %72 = vector.broadcast %cst_23 : f32 to vector<8x16xf32>
    %73 = arith.maximumf %71, %72 : vector<8x16xf32>
    %c0_24 = arith.constant 0 : index
    %c0_25 = arith.constant 0 : index
    %c0_26 = arith.constant 0 : index
    %74 = vector.load %arg9[%c0_24, %c0_25, %c0_26] : memref<1x8x16xf32, #tpu.memory_space<vmem>>, vector<1x8x16xf32>
    %75 = vector.shape_cast %74 : vector<1x8x16xf32> to vector<8x16xf32>
    %76 = vector.shape_cast %73 : vector<8x16xf32> to vector<1x8x16xf32>
    tpu.vector_store %arg9[%c0_24, %c0_25, %c0_26], %76 {strides = array<i32>} : memref<1x8x16xf32, #tpu.memory_space<vmem>>, vector<1x8x16xf32>,
    return
  }
  func.func @transform_0(%arg0: i32, %arg1: i32) -> (i32, i32, i32) {
    %c0_i32 = arith.constant 0 : i32
    %c0_i32_0 = arith.constant 0 : i32
    %c0_i32_1 = arith.constant 0 : i32
    return %arg0, %c0_i32, %c0_i32_0 : i32, i32, i32
  }
  func.func @transform_1(%arg0: i32, %arg1: i32) -> (i32, i32, i32) {
    %c0_i32 = arith.constant 0 : i32
    %c0_i32_0 = arith.constant 0 : i32
    return %arg0, %c0_i32, %arg1 : i32, i32, i32
  }
  func.func @transform_2(%arg0: i32, %arg1: i32) -> (i32, i32) {
    %c0_i32 = arith.constant 0 : i32
    %c0_i32_0 = arith.constant 0 : i32
    %c0_i32_1 = arith.constant 0 : i32
    return %c0_i32, %c0_i32_0 : i32, i32
  }
  func.func @transform_3(%arg0: i32, %arg1: i32) -> (i32, i32) {
    %c0_i32 = arith.constant 0 : i32
    %c0_i32_0 = arith.constant 0 : i32
    %c0_i32_1 = arith.constant 0 : i32
    return %c0_i32, %c0_i32_0 : i32, i32
  }
  func.func @transform_4(%arg0: i32, %arg1: i32) -> (i32, i32) {
    %c0_i32 = arith.constant 0 : i32
    %c0_i32_0 = arith.constant 0 : i32
    %c0_i32_1 = arith.constant 0 : i32
    return %c0_i32, %c0_i32_0 : i32, i32
  }
  func.func @transform_5(%arg0: i32, %arg1: i32) -> (i32, i32) {
    %c0_i32 = arith.constant 0 : i32
    %c0_i32_0 = arith.constant 0 : i32
    %c0_i32_1 = arith.constant 0 : i32
    return %c0_i32, %c0_i32_0 : i32, i32
  }
  func.func @transform_6(%arg0: i32, %arg1: i32) -> (i32, i32) {
    %c0_i32 = arith.constant 0 : i32
    %c0_i32_0 = arith.constant 0 : i32
    %c0_i32_1 = arith.constant 0 : i32
    return %c0_i32, %c0_i32_0 : i32, i32
  }
  func.func @transform_7(%arg0: i32, %arg1: i32) -> (i32, i32, i32) {
    %c0_i32 = arith.constant 0 : i32
    %c0_i32_0 = arith.constant 0 : i32
    return %arg0, %c0_i32, %arg1 : i32, i32, i32
  }
}

</mosaic_0001>

<bundles_post_ra>
// kernel: tpu_custom_call.1
= control target key start
LH: loop header
LB: loop body
LE: loop exit
PB: predicated region body
PF: predicated region fallthrough
CT: control target
= control target key end

     0   :  { %12 = vsyncpa [#allocation4], 0  ;;  %s1916_s0 = inlined_call_operand.vmem [shape: f32[2,4,16], index: 0, kind: input, shape index: {}]   ;;  %s1917_s1 = inlined_call_operand.vmem [shape: s32[2,8,16], index: 1, kind: input, shape index: {}]   ;;  %s1918_s2 = inlined_call_operand.vmem [shape: f32[4,4], index: 2, kind: input, shape index: {}]   ;;  %s1919_s3 = inlined_call_operand.vmem [shape: f32[4,1], index: 3, kind: input, shape index: {}]   ;;  %s1920_s4 = inlined_call_operand.vmem [shape: f32[8,4], index: 4, kind: input, shape index: {}]   ;;  %s1921_s5 = inlined_call_operand.vmem [shape: f32[8,4], index: 5, kind: input, shape index: {}]   ;;  %s1922_s6 = inlined_call_operand.vmem [shape: f32[8,1], index: 6, kind: input, shape index: {}]   ;;  %s1923_s7 = inlined_call_operand.hbm [shape: f32[2,8,16], index: 7, kind: output, shape index: {}]  }
   0x1   :  { %14 = vsyncpa [#allocation4 + $0x1], 0  ;;  %s1670_s24 = smov 0   ;;  %s1672_s25 = smov 0  }
   0x2   :  { %s1674_s26 = smov 0   ;;  %s1676_s27 = smov 0  }
   0x3   :  { %s1678_s28 = smov 0   ;;  %s1680_s29 = smov 0  }
   0x4 LB: > { %s1328_s30 = sadd.s32 4294967295, %s1623_s29   ;;  %s1329_s8 = sadd.s32 4294967294, %s1623_s29   ;;  %s1623_s29 = sphi %s1680_s29, %s20_s29   ;;  %s1619_s28 = sphi %s1678_s28, %s1933_s28   ;;  %s1615_s27 = sphi %s1676_s27, %s1932_s27   ;;  %s1611_s26 = sphi %s1674_s26, %s1931_s26   ;;  %s1607_s25 = sphi %s1672_s25, %s1930_s25   ;;  %s1603_s24 = sphi %s1670_s24, %s1929_s24  }
   0x5   : > { %s32_s9 = sadd.s32 1, %s1619_s28  ;;  %s200_s10 = sadd.s32 1, %s1611_s26 }
   0x6   : > { %p34_p0 = scmp.ge.s32.totalorder %s32_s9, 2  ;;  %p210_p1 = scmp.ne.s32.totalorder %s1611_s26, %s1607_s25 }
   0x7   : > { %p211_p2 = scmp.eq.s32.totalorder %s1328_s30, 1  ;;  %p216_p3 = scmp.ne.s32.totalorder %s1607_s25, %s1603_s24 }
   0x8   : > { %s1935_s9 = smov (%p34_p0, %s32_s9), 0  ;;  %p217_p5 = scmp.eq.s32.totalorder %s1329_s8, 1 }
   0x9   : > { %p1710_p4 = por %p211_p2, %p210_p1  ;;  %s195_s12 = ssub.s32 %s1619_s28, %s1935_s9 }
   0xa   : > { %p1332_p6 = scmp.ge.s32.totalorder %s1623_s29, 1  ;;  %p198_p7 = scmp.eq.s32.totalorder %s195_s12, 0 }
   0xb   : > { %p1717_p8 = por %p217_p5, %p216_p3  ;;  %p267_p9 = scmp.lt.s32.totalorder %s1623_s29, 3 }
   0xc   : > { %s1723_s14 = scalar_select %p198_p7, %s1611_s26, %s200_s10  }
   0xd   : > { %p268_p10 = pnand %p1332_p6, %p267_p9 }
   0xe   : > { %p305_p11 = scmp.lt.s32.totalorder (!%p268_p10), %s1615_s27, 1  ;;  %s302_s21 = sand.u32 (!%p268_p10), 1, %s1607_s25  }
   0xf   : > { %271 = sbr.rel (%p268_p10) target bundleno = 658 (0x292), region = 48  ;;  %s1333_s22 = sshll.u32 (!%p268_p10), %s302_s21, 3 }
  0x10   : > { %s304_s30 = scalar_lea.vmem (!%p268_p10), [#allocation3], %s1333_s22 }
  0x11   : > { %s1245_s8 = sshll.u32 (!%p268_p10), %s304_s30, 4  ;;  %s1246_s8 = int_to_ptr.vmem [resolvable:$true] %s1245_s8 }
  0x14   : > { %v1625_v0 = vmov 0.0   ;;  %vm1626_vm0 = vmmov 0   ;;  %v323_v1 = vld [vmem:[%s1919_s3] sm:$0xf]  ;;  %s306_s17 = scalar_select %p305_p11, %s1615_s27, 1  ;;  %v1627_v2 = vmov 0   ;;  %v411_v6 = vlaneseq }
  0x15   : > { %1416 = vmatprep.subr.mxu0 %v1625_v0  ;;  %1418 = vmatprep.mubr.msk.f32.mxu0 %vm1626_vm0, %v1625_v0  ;;  %vm333_vm1 = vcmask 1043456   ;;  %v1221_v3 = vld [vmem:[%s1922_s6] sm:$0xff]  ;;  %vm1924_vm2 = vcmask 31744   ;;  %v1628_v14 = vmov 1.0  }
  0x16   : > { %1546 = vset.pattern.permute.xlu0 %v1627_v2  ;;  %1421 = vmatprep.subr.mxu1 %v1625_v0  ;;  %s1334_s18 = sshll.u32 %s306_s17, 2  ;;  %v322_v4 = vld [vmem:[%s1918_s2] sm:$0xf]  ;;  %s1335_s10 = sshll.u32 %s306_s17, 3  ;;  %v1756_v7 = vshrl.u32 %v411_v6, 7 }
  0x17   : > { %326 = vperm.xlu0 %1546, %v323_v1   ;;  %1425 = vmatprep.mubr.msk.f32.mxu1 %vm1626_vm0, %v1625_v0  ;;  %s308_s23 = scalar_lea.vmem %s1916_s0, %s1334_s18  ;;  %s315_s16 = scalar_lea.vmem %s1917_s1, %s1335_s10  ;;  %v1065_v33 = vld [vmem:[%s1920_s4] sm:$0xff] }
  0x18   : > { %v1745_v5 = vld [vmem:[%s308_s23] sm:$0xf]  ;;  %v1759_v9 = vadd.s32 8, %v1756_v7  ;;  %v416_v10 = vsub.s32 0, %v1756_v7  ;;  %v500_v11 = vsub.s32 1, %v1756_v7  ;;  %v581_v15 = vsub.s32 2, %v1756_v7 }
  0x19   : > { %1417 = vmatpush3.msk.msra.mxu0 %vm333_vm1, %v1745_v5  ;;  %v317_v8 = vld [vmem:[%s315_s16] sm:$0xff]  ;;  %v662_v16 = vsub.s32 3, %v1756_v7  ;;  %v743_v19 = vsub.s32 4, %v1756_v7  ;;  %v824_v20 = vsub.s32 5, %v1756_v7  ;;  %v905_v23 = vsub.s32 6, %v1756_v7  ;;  %s1383_s23 = sshll.u32 %s1615_s27, 7 }
  0x1a   : > { %1419 = vmatmul.mubr.msk.f32.vlgmr.msra.gmra.mxu0 %vm1924_vm2, %v322_v4  ;;  %1428 = vmatprep.subr.mxu0 %v1625_v0  ;;  %v417_v12 = vrot.slane %v317_v8, %v416_v10  ;;  %v501_v13 = vrot.slane %v317_v8, %v500_v11  ;;  %v582_v17 = vrot.slane %v317_v8, %v581_v15  ;;  %v986_v24 = vsub.s32 7, %v1756_v7  ;;  %v1066_v57 = vld [vmem:[%s1921_s5] sm:$0xff]  ;;  %s1243_s15 = scalar_lea.hbm %s1923_s7, %s1383_s23  ;;  %s1231_s16 = scalar_lea.sflag [#allocation4], %s302_s21 }
  0x1b   : > { %1224 = vperm.xlu0 %1546, %v1221_v3   ;;  %1432 = vmatprep.mubr.msk.f32.mxu0 %vm1626_vm0, %v1625_v0  ;;  %v663_v18 = vrot.slane %v317_v8, %v662_v16  ;;  %v744_v21 = vrot.slane %v317_v8, %v743_v19  ;;  %v825_v22 = vrot.slane %v317_v8, %v824_v20  ;;  %vm424_vm2 = vcmask 130048   ;;  %s1547_s17 = scalar_lea.vmem %s1246_s8, 128  ;;  %s1629_s18 = smov [#allocation3]  }
  0x1c   : > { %vm419_vm3 = vcmp.eq.s32.totalorder %v1759_v9, %v417_v12  ;;  %vm503_vm4 = vcmp.eq.s32.totalorder %v1759_v9, %v501_v13  ;;  %vm418_vm5 = vcmp.eq.s32.totalorder %v1756_v7, %v417_v12  ;;  %vm502_vm6 = vcmp.eq.s32.totalorder %v1756_v7, %v501_v13  ;;  %p1548_p12 = scmp.ne.s32.totalorder %s1246_s8, %s1547_s17  ;;  %s1551_s19 = sshll.u32 %s1629_s18, 4  ;;  %s1552_s19 = int_to_ptr.vmem [resolvable:$false] %s1551_s19 }
  0x1d   : > { %1422 = vmatpush3.msk.msra.mxu1 %vm419_vm3, %v1628_v14  ;;  %1429 = vmatpush3.msk.msra.mxu0 %vm503_vm4, %v1628_v14  ;;  %vm584_vm7 = vcmp.eq.s32.totalorder %v1759_v9, %v582_v17  ;;  %vm665_vm8 = vcmp.eq.s32.totalorder %v1759_v9, %v663_v18  ;;  %vm583_vm9 = vcmp.eq.s32.totalorder %v1756_v7, %v582_v17  ;;  %s1553_s27 = scalar_lea.vmem %s1552_s19, 256  ;;  %p1554_p1 = scmp.lt.s32.totalorder %s1246_s8, %s1552_s19 }
  0x1e   : > { %1423 = vmatprep.subr.mxu1 %v1625_v0  ;;  %1430 = vmatprep.subr.mxu0 %v1625_v0  ;;  %vm664_vm10 = vcmp.eq.s32.totalorder %v1756_v7, %v663_v18  ;;  %vm746_vm11 = vcmp.eq.s32.totalorder %v1759_v9, %v744_v21  ;;  %vm827_vm12 = vcmp.eq.s32.totalorder %v1759_v9, %v825_v22  ;;  %p1549_p13 = pnand %p1548_p12, %p1710_p4  ;;  %p1555_p2 = scmp.lt.s32.totalorder %s1553_s27, %s1547_s17 }
  0x1f   : > { %1424 = vmatpush3.msk.msra.mxu1 %vm418_vm5, %v1628_v14  ;;  %1431 = vmatpush3.msk.msra.mxu0 %vm502_vm6, %v1628_v14  ;;  %vm745_vm13 = vcmp.eq.s32.totalorder %v1756_v7, %v744_v21  ;;  %vm826_vm14 = vcmp.eq.s32.totalorder %v1756_v7, %v825_v22  ;;  %v906_v25 = vrot.slane %v317_v8, %v905_v23  ;;  %vm408_vm6 = vcmask 125952  }
  0x20   : > { %1435 = vmatprep.subr.mxu1 %v1625_v0  ;;  %1442 = vmatprep.subr.mxu0 %v1625_v0  ;;  %v987_v26 = vrot.slane %v317_v8, %v986_v24  ;;  %p1550_p0 = pneg %p1549_p13  ;;  %p1556_p3 = por %p1555_p2, %p1554_p1 }
  0x21   : > { %vm908_vm15 = vcmp.eq.s32.totalorder %v1759_v9, %v906_v25  ;;  %vm907_vm4 = vcmp.eq.s32.totalorder %v1756_v7, %v906_v25 }
  0x22   : > { %vm989_vm3 = vcmp.eq.s32.totalorder %v1759_v9, %v987_v26  ;;  %vm988_vm5 = vcmp.eq.s32.totalorder %v1756_v7, %v987_v26  ;;  %p1557_p5 = pnand %p1556_p3, %p1550_p0 }
  0x92   : > { %v327_v27 = vpop.permute.xlu0 %326 }
  0x96   : > { %v1225_v62 = vpop.permute.xlu0 %1224 }
  0xda   : > { %v403_v28 = vpop.f32.mrf.mxu0 }
  0xdb   : > { %v404_v29 = vadd.f32 %v403_v28, %v327_v27 }
  0xdc   : > { %v1420_v30 = vpop.f32.mrf.mxu0 }
  0xdd   : > { %v407_v31 = vmax.f32 %v404_v29, 0.0 }
  0xdf   : > { %409 = vst.msk [vmem:[#allocation2] sm:$0xf] %vm408_vm6, %v407_v31 }
  0xe6   : > { %v410_v32 = vld [vmem:[#allocation2] sm:$0xf] }
  0xe7   : > { %1426 = vmatmul.mubr.msk.f32.vlgmr.msra.gmra.mxu1 %vm424_vm2, %v410_v32  ;;  %1433 = vmatmul.mubr.msk.f32.vlgmr.msra.gmra.mxu0 %vm424_vm2, %v410_v32 }
  0xe8   : > { %1436 = vmatpush3.msk.msra.mxu1 %vm584_vm7, %v1628_v14  ;;  %1443 = vmatpush3.msk.msra.mxu0 %vm665_vm8, %v1628_v14  ;;  %vm1927_vm7 = vcmask 31744  }
  0xe9   : > { %1437 = vmatprep.subr.mxu1 %v1625_v0  ;;  %1444 = vmatprep.subr.mxu0 %v1625_v0 }
  0xea   : > { %1438 = vmatpush3.msk.msra.mxu1 %vm583_vm9, %v1628_v14  ;;  %1439 = vmatprep.mubr.msk.f32.mxu1 %vm1626_vm0, %v1625_v0 }
  0xeb   : > { %1445 = vmatpush3.msk.msra.mxu0 %vm664_vm10, %v1628_v14  ;;  %1446 = vmatprep.mubr.msk.f32.mxu0 %vm1626_vm0, %v1625_v0 }
  0xec   : > { %1440 = vmatmul.mubr.msk.f32.vlgmr.msra.gmra.mxu1 %vm424_vm2, %v410_v32  ;;  %1447 = vmatmul.mubr.msk.f32.vlgmr.msra.gmra.mxu0 %vm424_vm2, %v410_v32 }
  0xed   : > { %1449 = vmatprep.subr.mxu1 %v1625_v0  ;;  %1456 = vmatprep.subr.mxu0 %v1625_v0 }
  0xee   : > { %1450 = vmatpush3.msk.msra.mxu1 %vm746_vm11, %v1628_v14  ;;  %1457 = vmatpush3.msk.msra.mxu0 %vm827_vm12, %v1628_v14 }
  0xef   : > { %1451 = vmatprep.subr.mxu1 %v1625_v0  ;;  %1458 = vmatprep.subr.mxu0 %v1625_v0 }
  0xf0   : > { %1452 = vmatpush3.msk.msra.mxu1 %vm745_vm13, %v1628_v14  ;;  %1453 = vmatprep.mubr.msk.f32.mxu1 %vm1626_vm0, %v1625_v0 }
  0xf1   : > { %1459 = vmatpush3.msk.msra.mxu0 %vm826_vm14, %v1628_v14  ;;  %1460 = vmatprep.mubr.msk.f32.mxu0 %vm1626_vm0, %v1625_v0 }
  0xf2   : > { %1454 = vmatmul.mubr.msk.f32.vlgmr.msra.gmra.mxu1 %vm424_vm2, %v410_v32  ;;  %1461 = vmatmul.mubr.msk.f32.vlgmr.msra.gmra.mxu0 %vm424_vm2, %v410_v32 }
  0xf3   : > { %1463 = vmatprep.subr.mxu1 %v1625_v0  ;;  %1470 = vmatprep.subr.mxu0 %v1625_v0 }
  0xf4   : > { %1464 = vmatpush3.msk.msra.mxu1 %vm908_vm15, %v1628_v14  ;;  %1471 = vmatpush3.msk.msra.mxu0 %vm989_vm3, %v1628_v14 }
  0xf5   : > { %1465 = vmatprep.subr.mxu1 %v1625_v0  ;;  %1472 = vmatprep.subr.mxu0 %v1625_v0 }
  0xf6   : > { %1466 = vmatpush3.msk.msra.mxu1 %vm907_vm4, %v1628_v14  ;;  %1467 = vmatprep.mubr.msk.f32.mxu1 %vm1626_vm0, %v1625_v0 }
  0xf7   : > { %1473 = vmatpush3.msk.msra.mxu0 %vm988_vm5, %v1628_v14  ;;  %1474 = vmatprep.mubr.msk.f32.mxu0 %vm1626_vm0, %v1625_v0 }
  0xf8   : > { %1468 = vmatmul.mubr.msk.f32.vlgmr.msra.gmra.mxu1 %vm424_vm2, %v410_v32  ;;  %1475 = vmatmul.mubr.msk.f32.vlgmr.msra.gmra.mxu0 %vm424_vm2, %v410_v32 }
  0xf9   : > { %1477 = vmatprep.subr.mxu1 %v1625_v0  ;;  %1482 = vmatprep.subr.mxu0 %v1625_v0 }
  0xfa   : > { %1479 = vmatprep.mubr.msk.f32.mxu1 %vm1626_vm0, %v1625_v0  ;;  %1483 = vmatpush3.msk.msra.mxu0 %vm333_vm1, %v1745_v5 }
  0xfb   : > { %1484 = vmatprep.mubr.msk.f32.mxu0 %vm1626_vm0, %v1625_v0  ;;  %vm1928_vm0 = vmmov %vm1927_vm7 }
  0xfc   : > { %1485 = vmatmul.mubr.msk.f32.vlgmr.msra.gmra.mxu0 %vm1927_vm7, %v1065_v33 }
 0x1a7   : > { %v494_v34 = vpop.f32.mrf.mxu1  ;;  %v574_v35 = vpop.f32.mrf.mxu0 }
 0x1a8   : > { %v578_v38 = vmax.f32 %v494_v34, %v574_v35 }
 0x1a9   : > { %v1427_v36 = vpop.f32.mrf.mxu1  ;;  %v1434_v37 = vpop.f32.mrf.mxu0 }
 0x1ac   : > { %v655_v39 = vpop.f32.mrf.mxu1  ;;  %v736_v40 = vpop.f32.mrf.mxu0 }
 0x1ad   : > { %v659_v41 = vmax.f32 %v578_v38, %v655_v39 }
 0x1ae   : > { %v1441_v42 = vpop.f32.mrf.mxu1  ;;  %v1448_v43 = vpop.f32.mrf.mxu0 }
 0x1af   : > { %v740_v44 = vmax.f32 %v659_v41, %v736_v40 }
 0x1b2   : > { %v817_v45 = vpop.f32.mrf.mxu1  ;;  %v898_v46 = vpop.f32.mrf.mxu0 }
 0x1b3   : > { %v821_v47 = vmax.f32 %v740_v44, %v817_v45 }
 0x1b4   : > { %v1455_v48 = vpop.f32.mrf.mxu1  ;;  %v1462_v49 = vpop.f32.mrf.mxu0 }
 0x1b5   : > { %v902_v50 = vmax.f32 %v821_v47, %v898_v46 }
 0x1b8   : > { %v979_v51 = vpop.f32.mrf.mxu1  ;;  %v1060_v52 = vpop.f32.mrf.mxu0 }
 0x1b9   : > { %v983_v53 = vmax.f32 %v902_v50, %v979_v51 }
 0x1ba   : > { %v1469_v54 = vpop.f32.mrf.mxu1  ;;  %v1476_v55 = vpop.f32.mrf.mxu0 }
 0x1bb   : > { %v1064_v56 = vmax.f32 %v983_v53, %v1060_v52 }
 0x1bc   : > { %v1217_v58 = vpop.f32.mrf.mxu0 }
 0x1bd   : > { %1478 = vmatpush3.msk.msra.mxu1 %vm333_vm1, %v1064_v56 }
 0x1be   : > { %1480 = vmatmul.mubr.msk.f32.vlgmr.msra.gmra.mxu1 %vm1928_vm0, %v1066_v57  ;;  %v1486_v59 = vpop.f32.mrf.mxu0 }
 0x27e   : > { %v1141_v60 = vpop.f32.mrf.mxu1 }
 0x27f   : > { %v1218_v61 = vadd.f32 %v1217_v58, %v1141_v60 }
 0x280   : > { %v1481_v63 = vpop.f32.mrf.mxu1 }
 0x281   : > { %v1227_v0 = vadd.f32 %v1225_v62, %v1218_v61 }
 0x283   : > { %v1228_v1 = vmax.f32 %v1227_v0, 0.0 }
 0x285   : > { %1229 = vst.msk [vmem:[%s304_s30] sm:$0xff] %vm424_vm2, %v1228_v1 }
 0x286   : > { %1560 = shalt.err (!%p1557_p5)
}
 0x287   : > { %s1561_s20 = scalar_lea.hbm %s1243_s15, 128  ;;  %s1565_s23 = scalar_lea.hbm %s1923_s7, 256 }
 0x288   : > { %p1562_p6 = scmp.ne.s32.totalorder %s1243_s15, %s1561_s20  ;;  %p1566_p10 = scmp.lt.s32.totalorder %s1243_s15, %s1923_s7 }
 0x289   : > { %p1567_p11 = scmp.lt.s32.totalorder %s1565_s23, %s1561_s20 }
 0x28a   : > { %p1563_p7 = pnand %p1562_p6, %p1710_p4 }
 0x28b   : > { %p1568_p12 = por %p1567_p11, %p1566_p10 }
 0x28c   : > { %p1564_p9 = pneg %p1563_p7 }
 0x28e   : > { %p1569_p13 = pnand %p1568_p12, %p1564_p9 }
 0x290   : > { %1572 = shalt.err (!%p1569_p13)
}
 0x291   : > { %1487 = dma.vmem_to_hbm [thread:$0]  (%p1710_p4), %s1246_s8, 128, %s1243_s15, %s1231_s16  }
 0x292 PF: > { %p1493_p0 = scmp.ge.s32.totalorder %s1623_s29, 2  ;;  %s1257_s12 = sand.u32 1, %s1603_s24  }
 0x293   : > { %s1258_s17 = scalar_lea.sflag [#allocation4], %s1257_s12 }
 0x294   : > { %p1490_p1 = pnand %p1493_p0, %p1717_p8 }
 0x296   : > { %p1491_p2 = pneg %p1490_p1 }
 0x298   : > { %1598 = dma.done.wait (%p1491_p2), %s1258_s17, 128  }
 0x299   : > { %1600 = vsyncadd (%p1491_p2), %s1258_s17, 4294967168  ;;  %s20_s29 = sadd.s32 1, %s1623_s29   ;;  %s1929_s24 = smov %s1607_s25 }
 0x29a   : > { %p17_p3 = scmp.ge.s32.totalorder %s20_s29, 4   ;;  %s1930_s25 = smov %s1611_s26 }
 0x29b   : > { %s1931_s26 = smov %s1723_s14  ;;  %s1932_s27 = smov %s1619_s28 }
 0x29c   : > { %s1933_s28 = smov %s1935_s9  ;;  %19 = sbr.rel (!%p17_p3) target bundleno = 4 (0x4), region = 90 }
 0x2a1   :  { %1263 = vsyncpa [#allocation4], 1 }
 0x2a2   :  { %1265 = vsyncpa [#allocation4 + $0x1], 1 }

</bundles_post_ra>
